<compile_context>
chip_gen: v7x
topology: tpu7x:2x2x1
jax: 0.10.0
libtpu: 0.0.40
codegen_flags: <defaults>
</compile_context>

<pallas_src>
import functools

import jax
import jax.numpy as jnp
from jax.experimental import pallas as pl
from jax.experimental.pallas import tpu as pltpu


def _default_matmul_dtype():
    """bf16 matmul operands on bf16-native MXUs (v6e/v7x); f32 elsewhere."""
    try:
        kind = jax.devices()[0].device_kind.lower()
    except Exception:
        return jnp.float32
    if "v6" in kind or "v7" in kind:
        return jnp.bfloat16
    return jnp.float32


def _invres_kernel(x_ref, w1_ref, b1_ref, wdw_ref, bdw_ref, w2_ref, b2_ref,
                   o_ref, *, H, W, res_connection, mm_dtype):
    HW = H * W
    x = x_ref[0]                                           # (C, HW) f32
    Cexp = w1_ref.shape[0]

    # --- 1x1 expansion conv (MXU) + bias + LeakyReLU -----------------------
    h = jnp.dot(w1_ref[...].astype(mm_dtype), x.astype(mm_dtype),
                preferred_element_type=jnp.float32)        # (Cexp, HW) f32
    h = h + b1_ref[...]                                    # (Cexp,1) sublane splat
    h = jnp.where(h > 0, h, 0.01 * h)

    # --- boundary masks for reflect padding (computed once per step) -------
    lane = jax.lax.broadcasted_iota(jnp.int32, (Cexp, HW), 1)   # flat pixel p
    if (W & (W - 1)) == 0:
        col = lane & (W - 1)                               # p % W (W power of 2)
    else:
        col = lane % W                                     # generic fallback
    col_first = col == 0
    col_last = col == (W - 1)
    row_first = lane < W
    row_last = lane >= (HW - W)

    # --- depthwise 3x3, reflect pad, via lane rolls + masked selects -------
    # roll(h, s)[p] == h[p - s]  (jnp.roll convention); all shifts positive.
    left = pltpu.roll(h, 1, axis=1)                        # h[p-1]
    right = pltpu.roll(h, HW - 1, axis=1)                  # h[p+1]
    c_m1 = jnp.where(col_first, right, left)               # h[i, reflect(j-1)]
    c_p1 = jnp.where(col_last, left, right)                # h[i, reflect(j+1)]

    acc = None
    for kj, a in enumerate((c_m1, h, c_p1)):               # kj = dj + 1
        up = pltpu.roll(a, W, axis=1)                      # a[i-1, j]
        down = pltpu.roll(a, HW - W, axis=1)               # a[i+1, j]
        rows = (jnp.where(row_first, down, up),            # ki = 0 (di = -1)
                a,                                         # ki = 1 (di =  0)
                jnp.where(row_last, up, down))             # ki = 2 (di = +1)
        for ki, tap in enumerate(rows):
            term = tap * wdw_ref[ki * 3 + kj]              # (Cexp,1) per-sublane scalar
            acc = term if acc is None else acc + term      # no zero-fill init
    acc = acc + bdw_ref[...]                               # (Cexp,1) bias

    # --- 1x1 projection conv (MXU) + bias + optional residual --------------
    y = jnp.dot(w2_ref[...].astype(mm_dtype), acc.astype(mm_dtype),
                preferred_element_type=jnp.float32)        # (C, HW)
    y = y + b2_ref[...]
    if res_connection:
        y = y + x
    o_ref[0] = y.astype(o_ref.dtype)                       # lane-dense store (HW=256)


def invres_block(x_nchw, params, *, res_connection=False, matmul_dtype=None):
    """Run InvResBlock forward. x_nchw: (N, C, H, W) float32."""
    w1, b1, wdw, bdw, w2, b2 = params
    N, C, H, W = x_nchw.shape
    HW = H * W
    Cexp = w1.shape[0]
    assert H >= 2 and W >= 2, "reflect padding of 1 requires H, W >= 2"
    if matmul_dtype is None:
        matmul_dtype = _default_matmul_dtype()

    x = x_nchw.reshape(N, C, HW)                           # free: NCHW kept as-is

    kernel = functools.partial(_invres_kernel, H=H, W=W,
                               res_connection=res_connection,
                               mm_dtype=matmul_dtype)

    out = pl.pallas_call(
        kernel,
        out_shape=jax.ShapeDtypeStruct((N, C, HW), x.dtype),
        grid=(N,),
        in_specs=[
            pl.BlockSpec((1, C, HW), lambda n: (n, 0, 0)),     # x
            pl.BlockSpec((Cexp, C), lambda n: (0, 0)),         # w1 (Cexp, C)
            pl.BlockSpec((Cexp, 1), lambda n: (0, 0)),         # b1
            pl.BlockSpec((9, Cexp, 1), lambda n: (0, 0, 0)),   # w_dw (k=ki*3+kj)
            pl.BlockSpec((Cexp, 1), lambda n: (0, 0)),         # b_dw
            pl.BlockSpec((C, Cexp), lambda n: (0, 0)),         # w2 (C, Cexp)
            pl.BlockSpec((C, 1), lambda n: (0, 0)),            # b2
        ],
        out_specs=pl.BlockSpec((1, C, HW), lambda n: (n, 0, 0)),
        compiler_params=pltpu.CompilerParams(
            dimension_semantics=("parallel",),                 # megacore over batch
            vmem_limit_bytes=32 * 1024 * 1024),
    )(x, w1, b1, wdw, bdw, w2, b2)

    return out.reshape(N, C, H, W)


def _ref_forward(x_nchw, params, *, res_connection, matmul_dtype=jnp.float32):
    """Pure-JAX reference (mirrors the PyTorch module semantics)."""
    w1, b1, wdw, bdw, w2, b2 = params
    N, C, H, W = x_nchw.shape
    Cexp = w1.shape[0]
    x = x_nchw.reshape(N, C, H * W)
    h = jnp.einsum('ec,ncp->nep', w1.astype(matmul_dtype), x.astype(matmul_dtype),
                   preferred_element_type=jnp.float32) + b1[None]
    h = jnp.where(h > 0, h, 0.01 * h)
    h = h.reshape(N, Cexp, H, W)
    hp = jnp.pad(h, ((0, 0), (0, 0), (1, 1), (1, 1)), mode='reflect')
    acc = jnp.zeros_like(h)
    for ki in range(3):
        for kj in range(3):
            acc = acc + hp[:, :, ki:ki + H, kj:kj + W] * wdw[ki * 3 + kj][None, :, :, None]
    acc = acc + bdw[None, :, :, None]
    acc = acc.reshape(N, Cexp, H * W)
    y = jnp.einsum('ce,nep->ncp', w2.astype(matmul_dtype), acc.astype(matmul_dtype),
                   preferred_element_type=jnp.float32) + b2[None]
    if res_connection:
        y = y + x
    return y.reshape(N, C, H, W)


def make_params(key, in_channels, exp_ratio=2):
    C = in_channels
    Cexp = C * exp_ratio
    ks = jax.random.split(key, 6)
    # Shapes follow the PyTorch module's parameters, laid out for the
    # channels-on-sublanes kernel:
    #   conv1.weight (Cexp, C, 1, 1) -> w1 (Cexp, C);  bias (Cexp,) -> (Cexp, 1)
    #   dwconv.weight (Cexp, 1, 3, 3) -> wdw (9, Cexp, 1) with k = ki*3 + kj
    #   conv2.weight (C, Cexp, 1, 1) -> w2 (C, Cexp);  bias (C,) -> (C, 1)
    w1 = 0.2 * jax.random.normal(ks[0], (Cexp, C), jnp.float32)
    b1 = 0.1 * jax.random.normal(ks[1], (Cexp, 1), jnp.float32)
    wdw = 0.2 * jax.random.normal(ks[2], (9, Cexp, 1), jnp.float32)
    bdw = 0.1 * jax.random.normal(ks[3], (Cexp, 1), jnp.float32)
    w2 = 0.2 * jax.random.normal(ks[4], (C, Cexp), jnp.float32)
    b2 = 0.1 * jax.random.normal(ks[5], (C, 1), jnp.float32)
    return (w1, b1, wdw, bdw, w2, b2)


if __name__ == "__main__":
    key = jax.random.PRNGKey(0)
    k_x, k_p = jax.random.split(key)

    N, C, H, W = 2, 4, 16, 16
    exp_ratio = 2
    x = jax.random.normal(k_x, (N, C, H, W), jnp.float32)
    params = make_params(k_p, C, exp_ratio)

    mm_dtype = _default_matmul_dtype()
    tol = 1e-5 if mm_dtype == jnp.float32 else 1e-3

    ok = True
    for res_connection in (False, True):
        out = invres_block(x, params, res_connection=res_connection,
                           matmul_dtype=mm_dtype)
        out = jax.block_until_ready(out)
        ref = _ref_forward(x, params, res_connection=res_connection,
                           matmul_dtype=mm_dtype)
        if not jnp.allclose(out, ref, atol=tol, rtol=tol):
            ok = False

    assert ok, "Pallas InvResBlock output mismatch vs reference"
    print("KERNEL_OK")
</pallas_src>

<mosaic_0001>
module attributes {stable_mosaic.version = 11 : i64} {
  func.func @_invres_kernel(%arg0: i32, %arg1: memref<1x4x256xf32, #tpu.memory_space<vmem>>, %arg2: memref<8x4xf32, #tpu.memory_space<vmem>>, %arg3: memref<8x1xf32, #tpu.memory_space<vmem>>, %arg4: memref<9x8x1xf32, #tpu.memory_space<vmem>>, %arg5: memref<8x1xf32, #tpu.memory_space<vmem>>, %arg6: memref<4x8xf32, #tpu.memory_space<vmem>>, %arg7: memref<4x1xf32, #tpu.memory_space<vmem>>, %arg8: memref<1x4x256xf32, #tpu.memory_space<vmem>>) attributes {dimension_semantics = [#tpu.dimension_semantics<parallel>], iteration_bounds = array<i64: 2>, scalar_prefetch = 0 : i64, scratch_operands = 0 : i64, tpu.core_type = #tpu.core_type<tc>, window_params = [{transform_indices = @transform_0, window_bounds = array<i64: 1, 4, 256>}, {pipeline_mode = #tpu.pipeline_mode<synchronous>, transform_indices = @transform_1, window_bounds = array<i64: 8, 4>}, {pipeline_mode = #tpu.pipeline_mode<synchronous>, transform_indices = @transform_2, window_bounds = array<i64: 8, 1>}, {pipeline_mode = #tpu.pipeline_mode<synchronous>, transform_indices = @transform_3, window_bounds = array<i64: 9, 8, 1>}, {pipeline_mode = #tpu.pipeline_mode<synchronous>, transform_indices = @transform_4, window_bounds = array<i64: 8, 1>}, {pipeline_mode = #tpu.pipeline_mode<synchronous>, transform_indices = @transform_5, window_bounds = array<i64: 4, 8>}, {pipeline_mode = #tpu.pipeline_mode<synchronous>, transform_indices = @transform_6, window_bounds = array<i64: 4, 1>}, {transform_indices = @transform_7, window_bounds = array<i64: 1, 4, 256>}]} {
    %c0 = arith.constant 0 : index
    %c0_0 = arith.constant 0 : index
    %c0_1 = arith.constant 0 : index
    %0 = vector.load %arg1[%c0, %c0_0, %c0_1] : memref<1x4x256xf32, #tpu.memory_space<vmem>>, vector<1x4x256xf32>
    %1 = vector.shape_cast %0 : vector<1x4x256xf32> to vector<4x256xf32>
    %c0_2 = arith.constant 0 : index
    %c0_3 = arith.constant 0 : index
    %2 = vector.load %arg2[%c0_2, %c0_3] : memref<8x4xf32, #tpu.memory_space<vmem>>, vector<8x4xf32>
    %cst = arith.constant dense<0.000000e+00> : vector<8x256xf32>
    %3 = tpu.matmul %2, %1, %cst {dimension_numbers = #tpu.dot_dimension_numbers<[1], [0], [0], [1], [0, 0, 1, 1], [], []>} : vector<8x4xf32>, vector<4x256xf32>, vector<8x256xf32> -> vector<8x256xf32>
    %c0_4 = arith.constant 0 : index
    %c0_5 = arith.constant 0 : index
    %4 = vector.load %arg3[%c0_4, %c0_5] : memref<8x1xf32, #tpu.memory_space<vmem>>, vector<8x1xf32>
    %5 = vector.broadcast %4 : vector<8x1xf32> to vector<8x256xf32>
    %6 = arith.addf %3, %5 : vector<8x256xf32>
    %cst_6 = arith.constant 0.000000e+00 : f32
    %7 = vector.broadcast %cst_6 : f32 to vector<8x256xf32>
    %8 = arith.cmpf ogt, %6, %7 : vector<8x256xf32>
    %cst_7 = arith.constant 0.00999999977 : f32
    %9 = vector.broadcast %cst_7 : f32 to vector<8x256xf32>
    %10 = arith.mulf %9, %6 : vector<8x256xf32>
    %11 = arith.select %8, %6, %10 : vector<8x256xi1>, vector<8x256xf32>
    %12 = tpu.iota {dimensions = array<i32: 1>} : vector<8x256xi32>
    %c15_i32 = arith.constant 15 : i32
    %13 = vector.broadcast %c15_i32 : i32 to vector<8x256xi32>
    %14 = arith.andi %12, %13 : vector<8x256xi32>
    %c0_i32 = arith.constant 0 : i32
    %15 = vector.broadcast %c0_i32 : i32 to vector<8x256xi32>
    %16 = arith.cmpi eq, %14, %15 : vector<8x256xi32>
    %c15_i32_8 = arith.constant 15 : i32
    %17 = vector.broadcast %c15_i32_8 : i32 to vector<8x256xi32>
    %18 = arith.cmpi eq, %14, %17 : vector<8x256xi32>
    %c16_i32 = arith.constant 16 : i32
    %19 = vector.broadcast %c16_i32 : i32 to vector<8x256xi32>
    %20 = arith.cmpi slt, %12, %19 : vector<8x256xi32>
    %c240_i32 = arith.constant 240 : i32
    %21 = vector.broadcast %c240_i32 : i32 to vector<8x256xi32>
    %22 = arith.cmpi sge, %12, %21 : vector<8x256xi32>
    %c1_i32 = arith.constant 1 : i32
    %23 = tpu.dynamic_rotate %11 by %c1_i32 dim 1 : vector<8x256xf32>, i32 -> vector<8x256xf32>
    %c255_i32 = arith.constant 255 : i32
    %24 = tpu.dynamic_rotate %11 by %c255_i32 dim 1 : vector<8x256xf32>, i32 -> vector<8x256xf32>
    %25 = arith.select %16, %24, %23 : vector<8x256xi1>, vector<8x256xf32>
    %26 = arith.select %18, %23, %24 : vector<8x256xi1>, vector<8x256xf32>
    %c16_i32_9 = arith.constant 16 : i32
    %27 = tpu.dynamic_rotate %25 by %c16_i32_9 dim 1 : vector<8x256xf32>, i32 -> vector<8x256xf32>
    %c240_i32_10 = arith.constant 240 : i32
    %28 = tpu.dynamic_rotate %25 by %c240_i32_10 dim 1 : vector<8x256xf32>, i32 -> vector<8x256xf32>
    %29 = arith.select %20, %28, %27 : vector<8x256xi1>, vector<8x256xf32>
    %30 = arith.select %22, %27, %28 : vector<8x256xi1>, vector<8x256xf32>
    %c0_11 = arith.constant 0 : index
    %c0_12 = arith.constant 0 : index
    %c0_13 = arith.constant 0 : index
    %31 = vector.load %arg4[%c0_11, %c0_12, %c0_13] : memref<9x8x1xf32, #tpu.memory_space<vmem>>, vector<1x8x1xf32>
    %32 = vector.shape_cast %31 : vector<1x8x1xf32> to vector<8x1xf32>
    %33 = vector.broadcast %32 : vector<8x1xf32> to vector<8x256xf32>
    %34 = arith.mulf %29, %33 : vector<8x256xf32>
    %c3 = arith.constant 3 : index
    %c0_14 = arith.constant 0 : index
    %c0_15 = arith.constant 0 : index
    %35 = vector.load %arg4[%c3, %c0_14, %c0_15] : memref<9x8x1xf32, #tpu.memory_space<vmem>>, vector<1x8x1xf32>
    %36 = vector.shape_cast %35 : vector<1x8x1xf32> to vector<8x1xf32>
    %37 = vector.broadcast %36 : vector<8x1xf32> to vector<8x256xf32>
    %38 = arith.mulf %25, %37 : vector<8x256xf32>
    %39 = arith.addf %34, %38 : vector<8x256xf32>
    %c6 = arith.constant 6 : index
    %c0_16 = arith.constant 0 : index
    %c0_17 = arith.constant 0 : index
    %40 = vector.load %arg4[%c6, %c0_16, %c0_17] : memref<9x8x1xf32, #tpu.memory_space<vmem>>, vector<1x8x1xf32>
    %41 = vector.shape_cast %40 : vector<1x8x1xf32> to vector<8x1xf32>
    %42 = vector.broadcast %41 : vector<8x1xf32> to vector<8x256xf32>
    %43 = arith.mulf %30, %42 : vector<8x256xf32>
    %44 = arith.addf %39, %43 : vector<8x256xf32>
    %c16_i32_18 = arith.constant 16 : i32
    %45 = tpu.dynamic_rotate %11 by %c16_i32_18 dim 1 : vector<8x256xf32>, i32 -> vector<8x256xf32>
    %c240_i32_19 = arith.constant 240 : i32
    %46 = tpu.dynamic_rotate %11 by %c240_i32_19 dim 1 : vector<8x256xf32>, i32 -> vector<8x256xf32>
    %47 = arith.select %20, %46, %45 : vector<8x256xi1>, vector<8x256xf32>
    %48 = arith.select %22, %45, %46 : vector<8x256xi1>, vector<8x256xf32>
    %c1 = arith.constant 1 : index
    %c0_20 = arith.constant 0 : index
    %c0_21 = arith.constant 0 : index
    %49 = vector.load %arg4[%c1, %c0_20, %c0_21] : memref<9x8x1xf32, #tpu.memory_space<vmem>>, vector<1x8x1xf32>
    %50 = vector.shape_cast %49 : vector<1x8x1xf32> to vector<8x1xf32>
    %51 = vector.broadcast %50 : vector<8x1xf32> to vector<8x256xf32>
    %52 = arith.mulf %47, %51 : vector<8x256xf32>
    %53 = arith.addf %44, %52 : vector<8x256xf32>
    %c4 = arith.constant 4 : index
    %c0_22 = arith.constant 0 : index
    %c0_23 = arith.constant 0 : index
    %54 = vector.load %arg4[%c4, %c0_22, %c0_23] : memref<9x8x1xf32, #tpu.memory_space<vmem>>, vector<1x8x1xf32>
    %55 = vector.shape_cast %54 : vector<1x8x1xf32> to vector<8x1xf32>
    %56 = vector.broadcast %55 : vector<8x1xf32> to vector<8x256xf32>
    %57 = arith.mulf %11, %56 : vector<8x256xf32>
    %58 = arith.addf %53, %57 : vector<8x256xf32>
    %c7 = arith.constant 7 : index
    %c0_24 = arith.constant 0 : index
    %c0_25 = arith.constant 0 : index
    %59 = vector.load %arg4[%c7, %c0_24, %c0_25] : memref<9x8x1xf32, #tpu.memory_space<vmem>>, vector<1x8x1xf32>
    %60 = vector.shape_cast %59 : vector<1x8x1xf32> to vector<8x1xf32>
    %61 = vector.broadcast %60 : vector<8x1xf32> to vector<8x256xf32>
    %62 = arith.mulf %48, %61 : vector<8x256xf32>
    %63 = arith.addf %58, %62 : vector<8x256xf32>
    %c16_i32_26 = arith.constant 16 : i32
    %64 = tpu.dynamic_rotate %26 by %c16_i32_26 dim 1 : vector<8x256xf32>, i32 -> vector<8x256xf32>
    %c240_i32_27 = arith.constant 240 : i32
    %65 = tpu.dynamic_rotate %26 by %c240_i32_27 dim 1 : vector<8x256xf32>, i32 -> vector<8x256xf32>
    %66 = arith.select %20, %65, %64 : vector<8x256xi1>, vector<8x256xf32>
    %67 = arith.select %22, %64, %65 : vector<8x256xi1>, vector<8x256xf32>
    %c2 = arith.constant 2 : index
    %c0_28 = arith.constant 0 : index
    %c0_29 = arith.constant 0 : index
    %68 = vector.load %arg4[%c2, %c0_28, %c0_29] : memref<9x8x1xf32, #tpu.memory_space<vmem>>, vector<1x8x1xf32>
    %69 = vector.shape_cast %68 : vector<1x8x1xf32> to vector<8x1xf32>
    %70 = vector.broadcast %69 : vector<8x1xf32> to vector<8x256xf32>
    %71 = arith.mulf %66, %70 : vector<8x256xf32>
    %72 = arith.addf %63, %71 : vector<8x256xf32>
    %c5 = arith.constant 5 : index
    %c0_30 = arith.constant 0 : index
    %c0_31 = arith.constant 0 : index
    %73 = vector.load %arg4[%c5, %c0_30, %c0_31] : memref<9x8x1xf32, #tpu.memory_space<vmem>>, vector<1x8x1xf32>
    %74 = vector.shape_cast %73 : vector<1x8x1xf32> to vector<8x1xf32>
    %75 = vector.broadcast %74 : vector<8x1xf32> to vector<8x256xf32>
    %76 = arith.mulf %26, %75 : vector<8x256xf32>
    %77 = arith.addf %72, %76 : vector<8x256xf32>
    %c8 = arith.constant 8 : index
    %c0_32 = arith.constant 0 : index
    %c0_33 = arith.constant 0 : index
    %78 = vector.load %arg4[%c8, %c0_32, %c0_33] : memref<9x8x1xf32, #tpu.memory_space<vmem>>, vector<1x8x1xf32>
    %79 = vector.shape_cast %78 : vector<1x8x1xf32> to vector<8x1xf32>
    %80 = vector.broadcast %79 : vector<8x1xf32> to vector<8x256xf32>
    %81 = arith.mulf %67, %80 : vector<8x256xf32>
    %82 = arith.addf %77, %81 : vector<8x256xf32>
    %c0_34 = arith.constant 0 : index
    %c0_35 = arith.constant 0 : index
    %83 = vector.load %arg5[%c0_34, %c0_35] : memref<8x1xf32, #tpu.memory_space<vmem>>, vector<8x1xf32>
    %84 = vector.broadcast %83 : vector<8x1xf32> to vector<8x256xf32>
    %85 = arith.addf %82, %84 : vector<8x256xf32>
    %c0_36 = arith.constant 0 : index
    %c0_37 = arith.constant 0 : index
    %86 = vector.load %arg6[%c0_36, %c0_37] : memref<4x8xf32, #tpu.memory_space<vmem>>, vector<4x8xf32>
    %cst_38 = arith.constant dense<0.000000e+00> : vector<4x256xf32>
    %87 = tpu.matmul %86, %85, %cst_38 {dimension_numbers = #tpu.dot_dimension_numbers<[1], [0], [0], [1], [0, 0, 1, 1], [], []>} : vector<4x8xf32>, vector<8x256xf32>, vector<4x256xf32> -> vector<4x256xf32>
    %c0_39 = arith.constant 0 : index
    %c0_40 = arith.constant 0 : index
    %88 = vector.load %arg7[%c0_39, %c0_40] : memref<4x1xf32, #tpu.memory_space<vmem>>, vector<4x1xf32>
    %89 = vector.broadcast %88 : vector<4x1xf32> to vector<4x256xf32>
    %90 = arith.addf %87, %89 : vector<4x256xf32>
    %c0_41 = arith.constant 0 : index
    %c0_42 = arith.constant 0 : index
    %c0_43 = arith.constant 0 : index
    %91 = vector.load %arg8[%c0_41, %c0_42, %c0_43] : memref<1x4x256xf32, #tpu.memory_space<vmem>>, vector<1x4x256xf32>
    %92 = vector.shape_cast %91 : vector<1x4x256xf32> to vector<4x256xf32>
    %93 = vector.shape_cast %90 : vector<4x256xf32> to vector<1x4x256xf32>
    tpu.vector_store %arg8[%c0_41, %c0_42, %c0_43], %93 {strides = array<i32>} : memref<1x4x256xf32, #tpu.memory_space<vmem>>, vector<1x4x256xf32>,
    return
  }
  func.func @transform_0(%arg0: i32) -> (i32, i32, i32) {
    %c0_i32 = arith.constant 0 : i32
    %c0_i32_0 = arith.constant 0 : i32
    %c0_i32_1 = arith.constant 0 : i32
    return %arg0, %c0_i32, %c0_i32_0 : i32, i32, i32
  }
  func.func @transform_1(%arg0: i32) -> (i32, i32) {
    %c0_i32 = arith.constant 0 : i32
    %c0_i32_0 = arith.constant 0 : i32
    %c0_i32_1 = arith.constant 0 : i32
    return %c0_i32, %c0_i32_0 : i32, i32
  }
  func.func @transform_2(%arg0: i32) -> (i32, i32) {
    %c0_i32 = arith.constant 0 : i32
    %c0_i32_0 = arith.constant 0 : i32
    %c0_i32_1 = arith.constant 0 : i32
    return %c0_i32, %c0_i32_0 : i32, i32
  }
  func.func @transform_3(%arg0: i32) -> (i32, i32, i32) {
    %c0_i32 = arith.constant 0 : i32
    %c0_i32_0 = arith.constant 0 : i32
    %c0_i32_1 = arith.constant 0 : i32
    %c0_i32_2 = arith.constant 0 : i32
    return %c0_i32, %c0_i32_0, %c0_i32_1 : i32, i32, i32
  }
  func.func @transform_4(%arg0: i32) -> (i32, i32) {
    %c0_i32 = arith.constant 0 : i32
    %c0_i32_0 = arith.constant 0 : i32
    %c0_i32_1 = arith.constant 0 : i32
    return %c0_i32, %c0_i32_0 : i32, i32
  }
  func.func @transform_5(%arg0: i32) -> (i32, i32) {
    %c0_i32 = arith.constant 0 : i32
    %c0_i32_0 = arith.constant 0 : i32
    %c0_i32_1 = arith.constant 0 : i32
    return %c0_i32, %c0_i32_0 : i32, i32
  }
  func.func @transform_6(%arg0: i32) -> (i32, i32) {
    %c0_i32 = arith.constant 0 : i32
    %c0_i32_0 = arith.constant 0 : i32
    %c0_i32_1 = arith.constant 0 : i32
    return %c0_i32, %c0_i32_0 : i32, i32
  }
  func.func @transform_7(%arg0: i32) -> (i32, i32, i32) {
    %c0_i32 = arith.constant 0 : i32
    %c0_i32_0 = arith.constant 0 : i32
    %c0_i32_1 = arith.constant 0 : i32
    return %arg0, %c0_i32, %c0_i32_0 : i32, i32, i32
  }
}

</mosaic_0001>

<bundles_post_ra>
// kernel: tpu_custom_call.1
= control target key start
LH: loop header
LB: loop body
LE: loop exit
PB: predicated region body
PF: predicated region fallthrough
CT: control target
= control target key end

     0   :  { %12 = vsyncpa [#allocation3], 0  ;;  %s1133_s0 = inlined_call_operand.vmem [shape: f32[2,4,256], index: 0, kind: input, shape index: {}]   ;;  %s1134_s1 = inlined_call_operand.vmem [shape: f32[8,4], index: 1, kind: input, shape index: {}]   ;;  %s1135_s2 = inlined_call_operand.vmem [shape: f32[8,1], index: 2, kind: input, shape index: {}]   ;;  %s1136_s3 = inlined_call_operand.vmem [shape: f32[9,8,1], index: 3, kind: input, shape index: {}]   ;;  %s1137_s4 = inlined_call_operand.vmem [shape: f32[8,1], index: 4, kind: input, shape index: {}]   ;;  %s1138_s5 = inlined_call_operand.vmem [shape: f32[4,8], index: 5, kind: input, shape index: {}]   ;;  %s1139_s6 = inlined_call_operand.vmem [shape: f32[4,1], index: 6, kind: input, shape index: {}]   ;;  %s1140_s7 = inlined_call_operand.hbm [shape: f32[2,4,256], index: 7, kind: output, shape index: {}]  }
   0x1   :  { %14 = vsyncpa [#allocation3 + $0x1], 0  ;;  %s903_s24 = smov 0   ;;  %s905_s25 = smov 0  }
   0x2   :  { %s907_s26 = smov 0   ;;  %s909_s27 = smov 0  }
   0x3 LB: > { %s924_s28 = sadd.s32 4294967295, %s854_s27   ;;  %s718_s29 = sadd.s32 4294967294, %s854_s27   ;;  %s854_s27 = sphi %s909_s27, %s1146_s27   ;;  %s850_s26 = sphi %s907_s26, %s1145_s26   ;;  %s846_s25 = sphi %s905_s25, %s1144_s25   ;;  %s842_s24 = sphi %s903_s24, %s1143_s24  }
   0x4   : > { %s928_s30 = sadd.s32 1, %s854_s27   ;;  %s179_s8 = sadd.s32 1, %s850_s26 }
   0x5   : > { %s176_s9 = ssub.s32 %s854_s27, %s928_s30  ;;  %p189_p0 = scmp.ne.s32.totalorder %s850_s26, %s846_s25 }
   0x6   : > { %p177_p1 = scmp.eq.s32.totalorder %s176_s9, 0  ;;  %p190_p2 = scmp.eq.s32.totalorder %s924_s28, 1 }
   0x7   : > { %p195_p3 = scmp.ne.s32.totalorder %s846_s25, %s842_s24  ;;  %p196_p4 = scmp.eq.s32.totalorder %s718_s29, 1 }
   0x8   : > { %s939_s10 = scalar_select %p177_p1, %s850_s26, %s179_s8  }
   0x9   : > { %p941_p5 = por %p190_p2, %p189_p0  ;;  %p945_p6 = por %p196_p4, %p195_p3 }
   0xa   : > { %p721_p7 = scmp.ge.s32.totalorder %s854_s27, 1  ;;  %p240_p8 = scmp.lt.s32.totalorder %s854_s27, 3 }
   0xc   : > { %p241_p9 = pnand %p721_p7, %p240_p8 }
   0xd   : > { %p272_p10 = scmp.lt.s32.totalorder (!%p241_p9), %s924_s28, 1  ;;  %v856_v0 = vmov (!%p241_p9), 0.0   ;;  %v857_v1 = vmov (!%p241_p9), 0   ;;  %v279_v2 = vld [vmem:[%s1135_s2] sm:$0xff] (!%p241_p9)  ;;  %vm291_vm0 = vcmask (!%p241_p9), 1043456   ;;  %vm287_vm1 = vcmask (!%p241_p9), 31744  }
   0xe   : > { %244 = sbr.rel (%p241_p9) target bundleno = 757 (0x2f5), region = 48  ;;  %360 = vmatprep.mubr.f32.mxu0 (!%p241_p9), %v856_v0  ;;  %789 = vset.pattern.permute.xlu0 (!%p241_p9), %v857_v1  ;;  %v278_v5 = vld [vmem:[%s1134_s1] sm:$0xff] (!%p241_p9)  ;;  %s858_s22 = smov (!%p241_p9), 1   ;;  %v728_v15 = vld [vmem:[%s1136_s3 + $0x18] sm:$0xff] (!%p241_p9)  ;;  %v730_v17 = vld [vmem:[%s1136_s3 + $0x8] sm:$0xff] (!%p241_p9)  ;;  %v373_v23 = vlaneseq (!%p241_p9)  ;;  %vm564_vm13 = vcmask (!%p241_p9), 64512  }
   0xf   : > { %282 = vperm.xlu0 (!%p241_p9), %789, %v279_v2   ;;  %790 = vset.pattern.permute.xlu1 (!%p241_p9), %v857_v1  ;;  %s859_s23 = smov (!%p241_p9), 127   ;;  %v421_v16 = vld [vmem:[%s1136_s3] sm:$0xff] (!%p241_p9)  ;;  %v729_v18 = vld [vmem:[%s1136_s3 + $0x30] sm:$0xff] (!%p241_p9)  ;;  %v732_v19 = vld [vmem:[%s1136_s3 + $0x38] sm:$0xff] (!%p241_p9)  ;;  %s860_s29 = smov (!%p241_p9), 16  }
  0x10   : > { %632 = vmatprep.mubr.f32.mxu1 (!%p241_p9), %v856_v0  ;;  %v731_v20 = vld [vmem:[%s1136_s3 + $0x20] sm:$0xff] (!%p241_p9)  ;;  %v734_v21 = vld [vmem:[%s1136_s3 + $0x28] sm:$0xff] (!%p241_p9)  ;;  %s861_s8 = smov (!%p241_p9), 112   ;;  %v733_v22 = vld [vmem:[%s1136_s3 + $0x10] sm:$0xff] (!%p241_p9)  ;;  %v1002_v24 = vand.u32 (!%p241_p9), 127, %v373_v23 }
  0x11   : > { %v735_v38 = vld [vmem:[%s1136_s3 + $0x40] sm:$0xff] (!%p241_p9) }
  0x12   : > { %v1005_v25 = vadd.s32 (!%p241_p9), 128, %v1002_v24  ;;  %v376_v28 = vand.u32 (!%p241_p9), 15, %v1002_v24  ;;  %vm390_vm4 = vcmp.lt.s32.totalorder (!%p241_p9), %v1002_v24, 1  ;;  %vm397_vm5 = vcmp.lt.s32.totalorder (!%p241_p9), %v1002_v24, 127  ;;  %v549_v42 = vld [vmem:[%s1137_s4] sm:$0xff] (!%p241_p9) }
  0x13   : > { %v558_v45 = vld [vmem:[%s1139_s6] sm:$0xf] (!%p241_p9)  ;;  %vm382_vm10 = vcmp.lt.s32.totalorder (!%p241_p9), %v1002_v24, 16  ;;  %vm414_vm11 = vcmp.lt.s32.totalorder (!%p241_p9), %v1002_v24, 112 }
  0x14   : > { %v377_v27 = vand.u32 (!%p241_p9), 15, %v1005_v25  ;;  %vm378_vm7 = vcmp.eq.s32.totalorder (!%p241_p9), %v376_v28, 0  ;;  %vm380_vm8 = vcmp.eq.s32.totalorder (!%p241_p9), %v376_v28, 15  ;;  %vm385_vm12 = vcmp.ge.s32.totalorder (!%p241_p9), %v1005_v25, 240  ;;  %v557_v25 = vld [vmem:[%s1138_s5] sm:$0xf] (!%p241_p9) }
  0x15   : > { %s273_s15 = scalar_select %p272_p10, %s924_s28, 1 }
  0x16   : > { %vm379_vm6 = vcmp.eq.s32.totalorder %v377_v27, 0  ;;  %vm381_vm9 = vcmp.eq.s32.totalorder %v377_v27, 15 }
  0x17   : > { %s742_s16 = sshll.u32 %s273_s15, 3 }
  0x18   : > { %s276_s19 = scalar_lea.vmem %s1133_s0, %s742_s16 }
  0x19   : > { %v277_v3 = vld [vmem:[%s276_s19] sm:$0xff] }
  0x1a   : > { %v286_v4 = vcombine.high %v277_v3, %v277_v3 }
  0x1c   : > { %725 = vmatprep.subr.msk.mxu0 %vm291_vm0, %v286_v4 }
  0x1d   : > { %726 = vmatpush1.msk.msra.mxu0 %vm291_vm0, %v277_v3 }
  0x1e   : > { %727 = vmatmul.mubr.msk.f32.vlgmr.msra.gmra.mrb[0].mxu0 %vm287_vm1, %v278_v5 }
  0x8e   : > { %v283_v6 = vpop.permute.xlu0 %282 }
  0xf1   : > { %v362_v7 = vpop.f32.mrb[0].mxu0 }
  0xf2   : > { %v363_v8 = vadd.f32 %v362_v7, %v283_v6  ;;  %v364_v9 = vpop.f32.mrb[1].mxu0 }
  0xf3   : > { %v365_v10 = vadd.f32 %v364_v9, %v283_v6 }
  0xf4   : > { %vm367_vm2 = vcmp.gt.f32.partialorder %v363_v8, 0.0  ;;  %v369_v11 = vmul.f32 0.01, %v363_v8 }
  0xf5   : > { %vm368_vm3 = vcmp.gt.f32.partialorder %v365_v10, 0.0  ;;  %v370_v12 = vmul.f32 0.01, %v365_v10 }
  0xf6   : > { %v962_v13 = vsel %vm367_vm2, %v363_v8, %v369_v11 }
  0xf7   : > { %v964_v14 = vsel %vm368_vm3, %v365_v10, %v370_v12  ;;  %386 = vrot.lane.b32.xlu0 %v962_v13, %s858_s22 }
  0xf8   : > { %388 = vrot.lane.b32.xlu1 %v964_v14, %s858_s22  ;;  %s269_s22 = sand.u32 1, %s846_s25  }
  0xf9   : > { %s645_s16 = scalar_lea.sflag [#allocation3], %s269_s22 }
  0xfb   : > { %395 = vrot.lane.b32.xlu0 %v964_v14, %s859_s23 }
  0xfc   : > { %393 = vrot.lane.b32.xlu1 %v962_v13, %s859_s23  ;;  %s722_s23 = sshll.u32 %s269_s22, 3 }
  0xff   : > { %433 = vperm.xlu0 %789, %v728_v15  }
 0x100   : > { %424 = vperm.xlu1 %790, %v421_v16  }
 0x103   : > { %471 = vperm.xlu0 %789, %v730_v17  }
 0x104   : > { %444 = vperm.xlu1 %790, %v729_v18  }
 0x107   : > { %493 = vperm.xlu0 %789, %v732_v19  }
 0x108   : > { %482 = vperm.xlu1 %790, %v731_v20  }
 0x10b   : > { %531 = vperm.xlu0 %789, %v734_v21  }
 0x10c   : > { %451 = vrot.lane.b32.xlu1 %v962_v13, %s860_s29 }
 0x10f   : > { %453 = vrot.lane.b32.xlu0 %v964_v14, %s860_s29 }
 0x110   : > { %457 = vrot.lane.b32.xlu1 %v962_v13, %s861_s8 }
 0x113   : > { %459 = vrot.lane.b32.xlu0 %v964_v14, %s861_s8 }
 0x114   : > { %520 = vperm.xlu1 %790, %v733_v22  }
 0x169   : > { %v387_v26 = vpop.permute.xlu0 %386 }
 0x16a   : > { %v389_v29 = vpop.permute.xlu1 %388 }
 0x16b   : > { %v391_v32 = vsel %vm390_vm4, %v387_v26, %v389_v29  ;;  %v392_v33 = vsel %vm390_vm4, %v389_v29, %v387_v26 }
 0x16d   : > { %v396_v30 = vpop.permute.xlu0 %395 }
 0x16e   : > { %v394_v31 = vpop.permute.xlu1 %393 }
 0x16f   : > { %v398_v34 = vsel %vm397_vm5, %v394_v31, %v396_v30  ;;  %v399_v35 = vsel %vm397_vm5, %v396_v30, %v394_v31 }
 0x170   : > { %v401_v36 = vsel %vm379_vm6, %v399_v35, %v391_v32  ;;  %v400_v37 = vsel %vm378_vm7, %v398_v34, %v392_v33  ;;  %v1018_v39 = vsel %vm380_vm8, %v392_v33, %v398_v34  ;;  %v1022_v40 = vsel %vm381_vm9, %v391_v32, %v399_v35 }
 0x171   : > { %406 = vrot.lane.b32.xlu0 %v401_v36, %s860_s29  ;;  %404 = vrot.lane.b32.xlu1 %v400_v37, %s860_s29 }
 0x175   : > { %412 = vrot.lane.b32.xlu0 %v401_v36, %s861_s8  ;;  %410 = vrot.lane.b32.xlu1 %v400_v37, %s861_s8 }
 0x179   : > { %500 = vrot.lane.b32.xlu0 %v1018_v39, %s860_s29  ;;  %542 = vperm.xlu1 %790, %v735_v38  }
 0x17d   : > { %506 = vrot.lane.b32.xlu0 %v1018_v39, %s861_s8  ;;  %502 = vrot.lane.b32.xlu1 %v1022_v40, %s860_s29  ;;  %s743_s29 = sshll.u32 %s924_s28, 7  ;;  %s862_s28 = smov [#allocation2]  }
 0x17e   : > { %v434_v41 = vpop.permute.xlu0 %433  ;;  %s1091_s15 = scalar_lea.hbm %s1140_s7, %s743_s29  ;;  %s796_s18 = sshll.u32 %s862_s28, 4  ;;  %s797_s18 = int_to_ptr.vmem [resolvable:$false] %s796_s18 }
 0x17f   : > { %v425_v43 = vpop.permute.xlu1 %424  ;;  %v437_v61 = vmul.f32 %v434_v41, %v401_v36  ;;  %v436_v8 = vmul.f32 %v434_v41, %v400_v37  ;;  %s798_s19 = scalar_lea.vmem %s797_s18, 256 }
 0x181   : > { %552 = vperm.xlu0 %789, %v549_v42   ;;  %508 = vrot.lane.b32.xlu1 %v1022_v40, %s861_s8  ;;  %s271_s8 = scalar_lea.vmem [#allocation2], %s722_s23 }
 0x182   : > { %v472_v44 = vpop.permute.xlu0 %471  ;;  %s659_s9 = sshll.u32 %s271_s8, 4  ;;  %s1093_s9 = int_to_ptr.vmem [resolvable:$true] %s659_s9 }
 0x183   : > { %v445_v46 = vpop.permute.xlu1 %444  ;;  %s792_s17 = scalar_lea.vmem %s1093_s9, 128  ;;  %p799_p0 = scmp.lt.s32.totalorder %s1093_s9, %s797_s18 }
 0x184   : > { %p793_p11 = scmp.ne.s32.totalorder %s1093_s9, %s792_s17  ;;  %p800_p1 = scmp.lt.s32.totalorder %s798_s19, %s792_s17 }
 0x185   : > { %561 = vperm.xlu1 %790, %v558_v45  }
 0x186   : > { %v494_v47 = vpop.permute.xlu0 %493  ;;  %p794_p12 = pnand %p793_p11, %p941_p5  ;;  %p801_p2 = por %p800_p1, %p799_p0 }
 0x187   : > { %v483_v48 = vpop.permute.xlu1 %482 }
 0x188   : > { %v486_v19 = vmul.f32 %v483_v48, %v964_v14  ;;  %v485_v23 = vmul.f32 %v483_v48, %v962_v13  ;;  %p795_p13 = pneg %p794_p12 }
 0x18a   : > { %v1036_v49 = vpop.permute.xlu0 %531  ;;  %p802_p3 = pnand %p801_p2, %p795_p13 }
 0x18b   : > { %v452_v50 = vpop.permute.xlu1 %451  ;;  %v535_v14 = vmul.f32 %v1036_v49, %v1022_v40 }
 0x18e   : > { %v454_v51 = vpop.permute.xlu0 %453 }
 0x18f   : > { %v458_v52 = vpop.permute.xlu1 %457  ;;  %v455_v54 = vsel %vm382_vm10, %v452_v50, %v454_v51  ;;  %v456_v9 = vsel %vm382_vm10, %v454_v51, %v452_v50  ;;  %v534_v50 = vmul.f32 %v1036_v49, %v1018_v39 }
 0x190   : > { %v475_v15 = vmul.f32 %v472_v44, %v455_v54 }
 0x192   : > { %v460_v53 = vpop.permute.xlu0 %459 }
 0x193   : > { %v462_v55 = vsel %vm414_vm11, %v460_v53, %v458_v52  ;;  %v521_v57 = vpop.permute.xlu1 %520  ;;  %v461_v2 = vsel %vm414_vm11, %v458_v52, %v460_v53 }
 0x194   : > { %v466_v56 = vsel %vm385_vm12, %v455_v54, %v462_v55  ;;  %v463_v12 = vsel %vm382_vm10, %v461_v2, %v456_v9  ;;  %v496_v29 = vmul.f32 %v494_v47, %v461_v2 }
 0x195   : > { %v474_v20 = vmul.f32 %v472_v44, %v463_v12  ;;  %v497_v26 = vmul.f32 %v494_v47, %v466_v56 }
 0x1e3   : > { %v405_v58 = vpop.permute.xlu1 %404  ;;  %v407_v59 = vpop.permute.xlu0 %406 }
 0x1e4   : > { %v408_v60 = vsel %vm382_vm10, %v405_v58, %v407_v59  ;;  %v409_v3 = vsel %vm382_vm10, %v407_v59, %v405_v58 }
 0x1e5   : > { %v428_v62 = vmul.f32 %v425_v43, %v408_v60 }
 0x1e7   : > { %v439_v63 = vadd.f32 %v437_v61, %v428_v62  ;;  %v411_v0 = vpop.permute.xlu1 %410  ;;  %v413_v1 = vpop.permute.xlu0 %412 }
 0x1e8   : > { %v415_v4 = vsel %vm414_vm11, %v411_v0, %v413_v1  ;;  %v416_v5 = vsel %vm414_vm11, %v413_v1, %v411_v0 }
 0x1e9   : > { %v417_v6 = vsel %vm382_vm10, %v415_v4, %v409_v3  ;;  %v420_v7 = vsel %vm385_vm12, %v408_v60, %v416_v5  ;;  %v447_v17 = vmul.f32 %v445_v46, %v415_v4 }
 0x1ea   : > { %v427_v10 = vmul.f32 %v425_v43, %v417_v6  ;;  %v448_v11 = vmul.f32 %v445_v46, %v420_v7 }
 0x1eb   : > { %v501_v34 = vpop.permute.xlu0 %500 }
 0x1ec   : > { %v438_v16 = vadd.f32 %v436_v8, %v427_v10  ;;  %v450_v18 = vadd.f32 %v448_v11, %v439_v63 }
 0x1ee   : > { %v449_v21 = vadd.f32 %v447_v17, %v438_v16  ;;  %v477_v22 = vadd.f32 %v475_v15, %v450_v18 }
 0x1ef   : > { %v507_v38 = vpop.permute.xlu0 %506 }
 0x1f0   : > { %v476_v27 = vadd.f32 %v474_v20, %v449_v21  ;;  %v488_v28 = vadd.f32 %v486_v19, %v477_v22 }
 0x1f2   : > { %v487_v30 = vadd.f32 %v485_v23, %v476_v27  ;;  %v499_v31 = vadd.f32 %v497_v26, %v488_v28 }
 0x1f4   : > { %v498_v32 = vadd.f32 %v496_v29, %v487_v30 }
 0x1f8   : > { %v543_v33 = vpop.permute.xlu1 %542 }
 0x1fc   : > { %v503_v35 = vpop.permute.xlu1 %502 }
 0x1fd   : > { %v504_v36 = vsel %vm382_vm10, %v501_v34, %v503_v35  ;;  %v505_v42 = vsel %vm382_vm10, %v503_v35, %v501_v34 }
 0x1fe   : > { %v524_v37 = vmul.f32 %v521_v57, %v504_v36 }
 0x200   : > { %v526_v41 = vadd.f32 %v524_v37, %v499_v31  ;;  %v509_v13 = vpop.permute.xlu1 %508  ;;  %v553_v53 = vpop.permute.xlu0 %552 }
 0x201   : > { %v510_v43 = vsel %vm414_vm11, %v507_v38, %v509_v13  ;;  %v511_v44 = vsel %vm414_vm11, %v509_v13, %v507_v38 }
 0x202   : > { %v512_v45 = vsel %vm382_vm10, %v510_v43, %v505_v42  ;;  %v515_v46 = vsel %vm385_vm12, %v504_v36, %v511_v44  ;;  %v537_v47 = vadd.f32 %v535_v14, %v526_v41  ;;  %v545_v54 = vmul.f32 %v543_v33, %v510_v43 }
 0x203   : > { %v523_v40 = vmul.f32 %v521_v57, %v512_v45  ;;  %v546_v48 = vmul.f32 %v543_v33, %v515_v46 }
 0x204   : > { %v562_v39 = vpop.permute.xlu1 %561 }
 0x205   : > { %v525_v51 = vadd.f32 %v523_v40, %v498_v32  ;;  %v548_v52 = vadd.f32 %v546_v48, %v537_v47 }
 0x207   : > { %v536_v55 = vadd.f32 %v534_v50, %v525_v51  ;;  %v556_v56 = vadd.f32 %v553_v53, %v548_v52 }
 0x209   : > { %v547_v58 = vadd.f32 %v545_v54, %v536_v55  ;;  %568 = vmatprep.subr.mxu1 %v556_v56 }
 0x20b   : > { %v555_v24 = vadd.f32 %v553_v53, %v547_v58 }
 0x20d   : > { %569 = vmatpush1.msra.mxu1 %v555_v24 }
 0x20e   : > { %736 = vmatmul.mubr.msk.f32.vlgmr.msra.gmra.mrb[0].mxu1 %vm564_vm13, %v557_v25 }
 0x2e1   : > { %v634_v49 = vpop.f32.mrb[0].mxu1 }
 0x2e2   : > { %v635_v57 = vadd.f32 %v634_v49, %v562_v39  ;;  %v636_v59 = vpop.f32.mrb[1].mxu1 }
 0x2e3   : > { %v637_v60 = vadd.f32 %v636_v59, %v562_v39 }
 0x2e5   : > { %v641_v61 = vcombine.low %v635_v57, %v637_v60 }
 0x2e7   : > { %643 = vst [vmem:[%s271_s8] sm:$0xff] %v641_v61 }
 0x2e8   : > { %805 = shalt.err (!%p802_p3)
}
 0x2e9   : > { %s806_s20 = scalar_lea.hbm %s1091_s15, 128  ;;  %s810_s23 = scalar_lea.hbm %s1140_s7, 256 }
 0x2ea   : > { %p807_p4 = scmp.ne.s32.totalorder %s1091_s15, %s806_s20  ;;  %p811_p9 = scmp.lt.u32.totalorder %s1091_s15, %s1140_s7 }
 0x2eb   : > { %p812_p10 = scmp.lt.u32.totalorder %s810_s23, %s806_s20  ;;  %p814_p12 = scmp.lt.u32.totalorder %s806_s20, %s1091_s15 }
 0x2ec   : > { %p808_p7 = pnand %p807_p4, %p941_p5 }
 0x2ed   : > { %p813_p11 = por %p812_p10, %p811_p9 }
 0x2ee   : > { %p809_p8 = pneg %p808_p7 }
 0x2ef   : > { %p815_p13 = por %p814_p12, %p813_p11 }
 0x2f1   : > { %p816_p0 = pnand %p815_p13, %p809_p8 }
 0x2f3   : > { %819 = shalt.err (!%p816_p0)
}
 0x2f4   : > { %744 = dma.vmem_to_hbm [thread:$0]  (%p941_p5), %s1093_s9, 128, %s1091_s15, %s645_s16  }
 0x2f5 PF: > { %p750_p1 = scmp.ge.s32.totalorder %s854_s27, 2  ;;  %s671_s13 = sand.u32 1, %s842_s24  }
 0x2f6   : > { %s672_s14 = scalar_lea.sflag [#allocation3], %s671_s13 }
 0x2f7   : > { %p747_p2 = pnand %p750_p1, %p945_p6 }
 0x2f9   : > { %837 = dma.done.wait (!%p747_p2), %s672_s14, 128  }
 0x2fa   : > { %839 = vsyncadd (!%p747_p2), %s672_s14, 4294967168  ;;  %p17_p3 = scmp.ge.s32.totalorder %s928_s30, 4   ;;  %s1143_s24 = smov %s846_s25 }
 0x2fb   : > { %s1144_s25 = smov %s850_s26  ;;  %s1145_s26 = smov %s939_s10 }
 0x2fc   : > { %s1146_s27 = smov %s928_s30  ;;  %19 = sbr.rel (!%p17_p3) target bundleno = 3 (0x3), region = 91 }
 0x303   :  { %677 = vsyncpa [#allocation3], 1 }
 0x304   :  { %679 = vsyncpa [#allocation3 + $0x1], 1 }

</bundles_post_ra>
